<compile_context>
chip_gen: v7x
topology: tpu7x:2x2x1
jax: 0.10.0
libtpu: 0.0.40
codegen_flags: <defaults>
</compile_context>

<pallas_src>
import functools

import jax
import jax.numpy as jnp
from jax.experimental import pallas as pl
from jax.experimental.pallas import tpu as pltpu


def _sampled_softmax_kernel(pre_ref, logstd_ref, eps_ref, out_ref, *, n_samples):
    # pre_ref / logstd_ref / out_ref : (C, TB) -- classes on sublanes, batch on
    # the 128-lane axis (lane-dense loads/stores).
    # eps_ref : (S, C, TB) -- all MC samples for this batch tile, in VMEM.
    pre = pre_ref[...].astype(jnp.float32)                       # (C, TB)
    std = jnp.exp(logstd_ref[...].astype(jnp.float32))           # (C, TB), once/tile

    acc = jnp.zeros(pre.shape, jnp.float32)
    # S is small (torch default 10) and static -> fully unrolled in-kernel loop.
    for s in range(n_samples):
        z = pre + eps_ref[s].astype(jnp.float32) * std           # (C, TB)
        z_max = jnp.max(z, axis=0, keepdims=True)                # (1, TB)
        e = jnp.exp(z - z_max)                                   # (C, TB)
        denom = jnp.sum(e, axis=0, keepdims=True)                # (1, TB)
        acc = acc + e / denom                                    # exact per-sample softmax

    out_ref[...] = (acc * (1.0 / n_samples)).astype(out_ref.dtype)


def _round_up(x, m):
    return ((x + m - 1) // m) * m


def _pick_batch_tile(B, C, S, eps_itemsize, in_itemsize,
                     budget_bytes=12 << 20, tb_cap=8192):
    """Largest lane-dense batch tile (multiple of 128) whose double-buffered
    working set stays well under the default scoped-VMEM limits
    (16 MiB v5e / 32 MiB v6e / 32 MiB v7x), capped so >=2 tiles exist."""
    per_elem = C * (2 * S * eps_itemsize      # eps block, double-buffered
                    + 4 * in_itemsize         # pre + log_std, double-buffered
                    + 8                       # f32 output, double-buffered
                    + 8)                      # headroom for compiler temporaries
    tb_budget = max(128, (budget_bytes // per_elem) // 128 * 128)
    # Cap at ~half the (128-rounded) batch so the "parallel" grid axis has at
    # least 2 tiles -> both v7x TensorCores get work.
    tb_half = _round_up(pl.cdiv(B, 2), 128)
    return min(tb_cap, tb_budget, tb_half)


def sampled_softmax_pallas(pre_logits, log_std, epsilon_scb):
    """pre_logits: (B, C), log_std: (B, C), epsilon_scb: (S, C, B) -> (B, C).

    epsilon_scb is the noise in lane-dense layout: epsilon_scb[s, c, b] is the
    draw torch would index as epsilon[b, s, c].  Producing it in this layout
    upstream avoids a full extra HBM pass over the dominant B*S*C stream.
    """
    B, C = pre_logits.shape
    S = epsilon_scb.shape[0]
    assert epsilon_scb.shape == (S, C, B)
    assert log_std.shape == (B, C)

    eps_itemsize = jnp.dtype(epsilon_scb.dtype).itemsize
    in_itemsize = jnp.dtype(pre_logits.dtype).itemsize

    TB = _pick_batch_tile(B, C, S, eps_itemsize, in_itemsize)
    B_pad = _round_up(B, TB)
    if B_pad // TB < 2:          # guarantee >= 2 parallel batch tiles (v7x megacore)
        B_pad = 2 * TB
    pad = B_pad - B

    # Layout plumbing (O(B*C) for the small tensors, O(S*C*pad) for eps).
    pre_t = pre_logits.T                       # (C, B)
    logstd_t = log_std.T                       # (C, B)
    eps_t = epsilon_scb                        # already (S, C, B)
    if pad:
        pre_t = jnp.pad(pre_t, ((0, 0), (0, pad)))
        logstd_t = jnp.pad(logstd_t, ((0, 0), (0, pad)))
        eps_t = jnp.pad(eps_t, ((0, 0), (0, 0), (0, pad)))
    # TODO(synk): in a production path, generate epsilon on-chip per batch tile
    # with pltpu.prng_seed/prng_random_bits to drop the B*S*C HBM stream entirely.

    grid = (B_pad // TB,)
    kernel = functools.partial(_sampled_softmax_kernel, n_samples=S)

    out_t = pl.pallas_call(
        kernel,
        out_shape=jax.ShapeDtypeStruct((C, B_pad), jnp.float32),
        grid_spec=pltpu.PrefetchScalarGridSpec(
            num_scalar_prefetch=0,
            grid=grid,
            in_specs=[
                pl.BlockSpec((C, TB), lambda b: (0, b)),       # pre_logits^T
                pl.BlockSpec((C, TB), lambda b: (0, b)),       # log_std^T
                pl.BlockSpec((S, C, TB), lambda b: (0, 0, b)), # all S samples/tile
            ],
            out_specs=pl.BlockSpec((C, TB), lambda b: (0, b)),
        ),
        compiler_params=pltpu.CompilerParams(
            # batch tiles shard across the 2 v7x TensorCores; no reduction axis
            # remains in the grid (S is handled inside the kernel body).
            dimension_semantics=("parallel",),
        ),
        cost_estimate=pl.CostEstimate(
            flops=6 * B_pad * S * C,
            transcendentals=B_pad * S * C + B_pad * C,
            bytes_accessed=(eps_itemsize * B_pad * S * C
                            + in_itemsize * 2 * B_pad * C
                            + 4 * B_pad * C),
        ),
    )(pre_t, logstd_t, eps_t)

    return out_t[:, :B].T                      # (B, C)


def sampled_softmax_reference(pre_logits, log_std, epsilon_scb):
    """Plain-JAX reference of torch's sampled_softmax for verification."""
    std = jnp.exp(log_std)                                  # (B, C)
    eps = jnp.transpose(epsilon_scb, (2, 0, 1))             # (B, S, C)
    z = pre_logits[:, None, :] + eps * std[:, None, :]
    probs = jax.nn.softmax(z, axis=-1)
    return jnp.mean(probs, axis=1)


# TODO(synk): BaseModelClass.forward() is abstract in the source module, so there is
# no concrete network forward pass to port; fit/evaluate/predict/featurise are host
# orchestration (optimizers, checkpointing, sklearn metrics) with no kernel equivalent.

if __name__ == "__main__":
    key = jax.random.PRNGKey(0)
    B, C, S = 4, 8, 10  # batch, n_targets (classes), MC samples (torch default 10)

    k1, k2, k3 = jax.random.split(key, 3)
    pre_logits = jax.random.normal(k1, (B, C), dtype=jnp.float32)
    log_std = 0.1 * jax.random.normal(k2, (B, C), dtype=jnp.float32)
    # Deterministic noise generated directly in lane-dense (S, C, B) layout.
    epsilon_scb = jax.random.normal(k3, (S, C, B), dtype=jnp.float32)

    out = jax.block_until_ready(sampled_softmax_pallas(pre_logits, log_std, epsilon_scb))
    ref = sampled_softmax_reference(pre_logits, log_std, epsilon_scb)

    assert out.shape == (B, C)
    # Exact per-sample normalization -> rows sum to 1 at f32 precision.
    assert jnp.allclose(jnp.sum(out, axis=-1), 1.0, atol=1e-5)
    assert jnp.allclose(out, ref, atol=1e-5, rtol=1e-5)

    print("KERNEL_OK")
</pallas_src>

<mosaic_0001>
module attributes {stable_mosaic.version = 11 : i64} {
  func.func @_sampled_softmax_kernel(%arg0: i32, %arg1: memref<8x128xf32, #tpu.memory_space<vmem>>, %arg2: memref<8x128xf32, #tpu.memory_space<vmem>>, %arg3: memref<10x8x128xf32, #tpu.memory_space<vmem>>, %arg4: memref<8x128xf32, #tpu.memory_space<vmem>>) attributes {dimension_semantics = [#tpu.dimension_semantics<parallel>], iteration_bounds = array<i64: 2>, scalar_prefetch = 0 : i64, scratch_operands = 0 : i64, tpu.core_type = #tpu.core_type<tc>, window_params = [{transform_indices = @transform_0, window_bounds = array<i64: 8, 128>}, {transform_indices = @transform_1, window_bounds = array<i64: 8, 128>}, {transform_indices = @transform_2, window_bounds = array<i64: 10, 8, 128>}, {transform_indices = @transform_3, window_bounds = array<i64: 8, 128>}]} {
    %c0 = arith.constant 0 : index
    %c0_0 = arith.constant 0 : index
    %0 = vector.load %arg1[%c0, %c0_0] : memref<8x128xf32, #tpu.memory_space<vmem>>, vector<8x128xf32>
    %c0_1 = arith.constant 0 : index
    %c0_2 = arith.constant 0 : index
    %1 = vector.load %arg2[%c0_1, %c0_2] : memref<8x128xf32, #tpu.memory_space<vmem>>, vector<8x128xf32>
    %2 = math.exp %1 : vector<8x128xf32>
    %cst = arith.constant 0.000000e+00 : f32
    %3 = vector.broadcast %cst : f32 to vector<8x128xf32>
    %c0_3 = arith.constant 0 : index
    %c0_4 = arith.constant 0 : index
    %c0_5 = arith.constant 0 : index
    %4 = vector.load %arg3[%c0_3, %c0_4, %c0_5] : memref<10x8x128xf32, #tpu.memory_space<vmem>>, vector<1x8x128xf32>
    %5 = vector.shape_cast %4 : vector<1x8x128xf32> to vector<8x128xf32>
    %6 = arith.mulf %5, %2 : vector<8x128xf32>
    %7 = arith.addf %0, %6 : vector<8x128xf32>
    %cst_6 = arith.constant dense<0xFF800000> : vector<128xf32>
    %8 = vector.multi_reduction <maximumf>, %7, %cst_6 [0] : vector<8x128xf32> to vector<128xf32>
    %9 = vector.shape_cast %8 : vector<128xf32> to vector<1x128xf32>
    %10 = vector.broadcast %9 : vector<1x128xf32> to vector<8x128xf32>
    %11 = arith.subf %7, %10 : vector<8x128xf32>
    %12 = math.exp %11 : vector<8x128xf32>
    %cst_7 = arith.constant dense<0.000000e+00> : vector<128xf32>
    %13 = vector.multi_reduction <add>, %12, %cst_7 [0] : vector<8x128xf32> to vector<128xf32>
    %14 = vector.shape_cast %13 : vector<128xf32> to vector<1x128xf32>
    %15 = vector.broadcast %14 : vector<1x128xf32> to vector<8x128xf32>
    %16 = arith.divf %12, %15 : vector<8x128xf32>
    %17 = arith.addf %3, %16 : vector<8x128xf32>
    %c1 = arith.constant 1 : index
    %c0_8 = arith.constant 0 : index
    %c0_9 = arith.constant 0 : index
    %18 = vector.load %arg3[%c1, %c0_8, %c0_9] : memref<10x8x128xf32, #tpu.memory_space<vmem>>, vector<1x8x128xf32>
    %19 = vector.shape_cast %18 : vector<1x8x128xf32> to vector<8x128xf32>
    %20 = arith.mulf %19, %2 : vector<8x128xf32>
    %21 = arith.addf %0, %20 : vector<8x128xf32>
    %cst_10 = arith.constant dense<0xFF800000> : vector<128xf32>
    %22 = vector.multi_reduction <maximumf>, %21, %cst_10 [0] : vector<8x128xf32> to vector<128xf32>
    %23 = vector.shape_cast %22 : vector<128xf32> to vector<1x128xf32>
    %24 = vector.broadcast %23 : vector<1x128xf32> to vector<8x128xf32>
    %25 = arith.subf %21, %24 : vector<8x128xf32>
    %26 = math.exp %25 : vector<8x128xf32>
    %cst_11 = arith.constant dense<0.000000e+00> : vector<128xf32>
    %27 = vector.multi_reduction <add>, %26, %cst_11 [0] : vector<8x128xf32> to vector<128xf32>
    %28 = vector.shape_cast %27 : vector<128xf32> to vector<1x128xf32>
    %29 = vector.broadcast %28 : vector<1x128xf32> to vector<8x128xf32>
    %30 = arith.divf %26, %29 : vector<8x128xf32>
    %31 = arith.addf %17, %30 : vector<8x128xf32>
    %c2 = arith.constant 2 : index
    %c0_12 = arith.constant 0 : index
    %c0_13 = arith.constant 0 : index
    %32 = vector.load %arg3[%c2, %c0_12, %c0_13] : memref<10x8x128xf32, #tpu.memory_space<vmem>>, vector<1x8x128xf32>
    %33 = vector.shape_cast %32 : vector<1x8x128xf32> to vector<8x128xf32>
    %34 = arith.mulf %33, %2 : vector<8x128xf32>
    %35 = arith.addf %0, %34 : vector<8x128xf32>
    %cst_14 = arith.constant dense<0xFF800000> : vector<128xf32>
    %36 = vector.multi_reduction <maximumf>, %35, %cst_14 [0] : vector<8x128xf32> to vector<128xf32>
    %37 = vector.shape_cast %36 : vector<128xf32> to vector<1x128xf32>
    %38 = vector.broadcast %37 : vector<1x128xf32> to vector<8x128xf32>
    %39 = arith.subf %35, %38 : vector<8x128xf32>
    %40 = math.exp %39 : vector<8x128xf32>
    %cst_15 = arith.constant dense<0.000000e+00> : vector<128xf32>
    %41 = vector.multi_reduction <add>, %40, %cst_15 [0] : vector<8x128xf32> to vector<128xf32>
    %42 = vector.shape_cast %41 : vector<128xf32> to vector<1x128xf32>
    %43 = vector.broadcast %42 : vector<1x128xf32> to vector<8x128xf32>
    %44 = arith.divf %40, %43 : vector<8x128xf32>
    %45 = arith.addf %31, %44 : vector<8x128xf32>
    %c3 = arith.constant 3 : index
    %c0_16 = arith.constant 0 : index
    %c0_17 = arith.constant 0 : index
    %46 = vector.load %arg3[%c3, %c0_16, %c0_17] : memref<10x8x128xf32, #tpu.memory_space<vmem>>, vector<1x8x128xf32>
    %47 = vector.shape_cast %46 : vector<1x8x128xf32> to vector<8x128xf32>
    %48 = arith.mulf %47, %2 : vector<8x128xf32>
    %49 = arith.addf %0, %48 : vector<8x128xf32>
    %cst_18 = arith.constant dense<0xFF800000> : vector<128xf32>
    %50 = vector.multi_reduction <maximumf>, %49, %cst_18 [0] : vector<8x128xf32> to vector<128xf32>
    %51 = vector.shape_cast %50 : vector<128xf32> to vector<1x128xf32>
    %52 = vector.broadcast %51 : vector<1x128xf32> to vector<8x128xf32>
    %53 = arith.subf %49, %52 : vector<8x128xf32>
    %54 = math.exp %53 : vector<8x128xf32>
    %cst_19 = arith.constant dense<0.000000e+00> : vector<128xf32>
    %55 = vector.multi_reduction <add>, %54, %cst_19 [0] : vector<8x128xf32> to vector<128xf32>
    %56 = vector.shape_cast %55 : vector<128xf32> to vector<1x128xf32>
    %57 = vector.broadcast %56 : vector<1x128xf32> to vector<8x128xf32>
    %58 = arith.divf %54, %57 : vector<8x128xf32>
    %59 = arith.addf %45, %58 : vector<8x128xf32>
    %c4 = arith.constant 4 : index
    %c0_20 = arith.constant 0 : index
    %c0_21 = arith.constant 0 : index
    %60 = vector.load %arg3[%c4, %c0_20, %c0_21] : memref<10x8x128xf32, #tpu.memory_space<vmem>>, vector<1x8x128xf32>
    %61 = vector.shape_cast %60 : vector<1x8x128xf32> to vector<8x128xf32>
    %62 = arith.mulf %61, %2 : vector<8x128xf32>
    %63 = arith.addf %0, %62 : vector<8x128xf32>
    %cst_22 = arith.constant dense<0xFF800000> : vector<128xf32>
    %64 = vector.multi_reduction <maximumf>, %63, %cst_22 [0] : vector<8x128xf32> to vector<128xf32>
    %65 = vector.shape_cast %64 : vector<128xf32> to vector<1x128xf32>
    %66 = vector.broadcast %65 : vector<1x128xf32> to vector<8x128xf32>
    %67 = arith.subf %63, %66 : vector<8x128xf32>
    %68 = math.exp %67 : vector<8x128xf32>
    %cst_23 = arith.constant dense<0.000000e+00> : vector<128xf32>
    %69 = vector.multi_reduction <add>, %68, %cst_23 [0] : vector<8x128xf32> to vector<128xf32>
    %70 = vector.shape_cast %69 : vector<128xf32> to vector<1x128xf32>
    %71 = vector.broadcast %70 : vector<1x128xf32> to vector<8x128xf32>
    %72 = arith.divf %68, %71 : vector<8x128xf32>
    %73 = arith.addf %59, %72 : vector<8x128xf32>
    %c5 = arith.constant 5 : index
    %c0_24 = arith.constant 0 : index
    %c0_25 = arith.constant 0 : index
    %74 = vector.load %arg3[%c5, %c0_24, %c0_25] : memref<10x8x128xf32, #tpu.memory_space<vmem>>, vector<1x8x128xf32>
    %75 = vector.shape_cast %74 : vector<1x8x128xf32> to vector<8x128xf32>
    %76 = arith.mulf %75, %2 : vector<8x128xf32>
    %77 = arith.addf %0, %76 : vector<8x128xf32>
    %cst_26 = arith.constant dense<0xFF800000> : vector<128xf32>
    %78 = vector.multi_reduction <maximumf>, %77, %cst_26 [0] : vector<8x128xf32> to vector<128xf32>
    %79 = vector.shape_cast %78 : vector<128xf32> to vector<1x128xf32>
    %80 = vector.broadcast %79 : vector<1x128xf32> to vector<8x128xf32>
    %81 = arith.subf %77, %80 : vector<8x128xf32>
    %82 = math.exp %81 : vector<8x128xf32>
    %cst_27 = arith.constant dense<0.000000e+00> : vector<128xf32>
    %83 = vector.multi_reduction <add>, %82, %cst_27 [0] : vector<8x128xf32> to vector<128xf32>
    %84 = vector.shape_cast %83 : vector<128xf32> to vector<1x128xf32>
    %85 = vector.broadcast %84 : vector<1x128xf32> to vector<8x128xf32>
    %86 = arith.divf %82, %85 : vector<8x128xf32>
    %87 = arith.addf %73, %86 : vector<8x128xf32>
    %c6 = arith.constant 6 : index
    %c0_28 = arith.constant 0 : index
    %c0_29 = arith.constant 0 : index
    %88 = vector.load %arg3[%c6, %c0_28, %c0_29] : memref<10x8x128xf32, #tpu.memory_space<vmem>>, vector<1x8x128xf32>
    %89 = vector.shape_cast %88 : vector<1x8x128xf32> to vector<8x128xf32>
    %90 = arith.mulf %89, %2 : vector<8x128xf32>
    %91 = arith.addf %0, %90 : vector<8x128xf32>
    %cst_30 = arith.constant dense<0xFF800000> : vector<128xf32>
    %92 = vector.multi_reduction <maximumf>, %91, %cst_30 [0] : vector<8x128xf32> to vector<128xf32>
    %93 = vector.shape_cast %92 : vector<128xf32> to vector<1x128xf32>
    %94 = vector.broadcast %93 : vector<1x128xf32> to vector<8x128xf32>
    %95 = arith.subf %91, %94 : vector<8x128xf32>
    %96 = math.exp %95 : vector<8x128xf32>
    %cst_31 = arith.constant dense<0.000000e+00> : vector<128xf32>
    %97 = vector.multi_reduction <add>, %96, %cst_31 [0] : vector<8x128xf32> to vector<128xf32>
    %98 = vector.shape_cast %97 : vector<128xf32> to vector<1x128xf32>
    %99 = vector.broadcast %98 : vector<1x128xf32> to vector<8x128xf32>
    %100 = arith.divf %96, %99 : vector<8x128xf32>
    %101 = arith.addf %87, %100 : vector<8x128xf32>
    %c7 = arith.constant 7 : index
    %c0_32 = arith.constant 0 : index
    %c0_33 = arith.constant 0 : index
    %102 = vector.load %arg3[%c7, %c0_32, %c0_33] : memref<10x8x128xf32, #tpu.memory_space<vmem>>, vector<1x8x128xf32>
    %103 = vector.shape_cast %102 : vector<1x8x128xf32> to vector<8x128xf32>
    %104 = arith.mulf %103, %2 : vector<8x128xf32>
    %105 = arith.addf %0, %104 : vector<8x128xf32>
    %cst_34 = arith.constant dense<0xFF800000> : vector<128xf32>
    %106 = vector.multi_reduction <maximumf>, %105, %cst_34 [0] : vector<8x128xf32> to vector<128xf32>
    %107 = vector.shape_cast %106 : vector<128xf32> to vector<1x128xf32>
    %108 = vector.broadcast %107 : vector<1x128xf32> to vector<8x128xf32>
    %109 = arith.subf %105, %108 : vector<8x128xf32>
    %110 = math.exp %109 : vector<8x128xf32>
    %cst_35 = arith.constant dense<0.000000e+00> : vector<128xf32>
    %111 = vector.multi_reduction <add>, %110, %cst_35 [0] : vector<8x128xf32> to vector<128xf32>
    %112 = vector.shape_cast %111 : vector<128xf32> to vector<1x128xf32>
    %113 = vector.broadcast %112 : vector<1x128xf32> to vector<8x128xf32>
    %114 = arith.divf %110, %113 : vector<8x128xf32>
    %115 = arith.addf %101, %114 : vector<8x128xf32>
    %c8 = arith.constant 8 : index
    %c0_36 = arith.constant 0 : index
    %c0_37 = arith.constant 0 : index
    %116 = vector.load %arg3[%c8, %c0_36, %c0_37] : memref<10x8x128xf32, #tpu.memory_space<vmem>>, vector<1x8x128xf32>
    %117 = vector.shape_cast %116 : vector<1x8x128xf32> to vector<8x128xf32>
    %118 = arith.mulf %117, %2 : vector<8x128xf32>
    %119 = arith.addf %0, %118 : vector<8x128xf32>
    %cst_38 = arith.constant dense<0xFF800000> : vector<128xf32>
    %120 = vector.multi_reduction <maximumf>, %119, %cst_38 [0] : vector<8x128xf32> to vector<128xf32>
    %121 = vector.shape_cast %120 : vector<128xf32> to vector<1x128xf32>
    %122 = vector.broadcast %121 : vector<1x128xf32> to vector<8x128xf32>
    %123 = arith.subf %119, %122 : vector<8x128xf32>
    %124 = math.exp %123 : vector<8x128xf32>
    %cst_39 = arith.constant dense<0.000000e+00> : vector<128xf32>
    %125 = vector.multi_reduction <add>, %124, %cst_39 [0] : vector<8x128xf32> to vector<128xf32>
    %126 = vector.shape_cast %125 : vector<128xf32> to vector<1x128xf32>
    %127 = vector.broadcast %126 : vector<1x128xf32> to vector<8x128xf32>
    %128 = arith.divf %124, %127 : vector<8x128xf32>
    %129 = arith.addf %115, %128 : vector<8x128xf32>
    %c9 = arith.constant 9 : index
    %c0_40 = arith.constant 0 : index
    %c0_41 = arith.constant 0 : index
    %130 = vector.load %arg3[%c9, %c0_40, %c0_41] : memref<10x8x128xf32, #tpu.memory_space<vmem>>, vector<1x8x128xf32>
    %131 = vector.shape_cast %130 : vector<1x8x128xf32> to vector<8x128xf32>
    %132 = arith.mulf %131, %2 : vector<8x128xf32>
    %133 = arith.addf %0, %132 : vector<8x128xf32>
    %cst_42 = arith.constant dense<0xFF800000> : vector<128xf32>
    %134 = vector.multi_reduction <maximumf>, %133, %cst_42 [0] : vector<8x128xf32> to vector<128xf32>
    %135 = vector.shape_cast %134 : vector<128xf32> to vector<1x128xf32>
    %136 = vector.broadcast %135 : vector<1x128xf32> to vector<8x128xf32>
    %137 = arith.subf %133, %136 : vector<8x128xf32>
    %138 = math.exp %137 : vector<8x128xf32>
    %cst_43 = arith.constant dense<0.000000e+00> : vector<128xf32>
    %139 = vector.multi_reduction <add>, %138, %cst_43 [0] : vector<8x128xf32> to vector<128xf32>
    %140 = vector.shape_cast %139 : vector<128xf32> to vector<1x128xf32>
    %141 = vector.broadcast %140 : vector<1x128xf32> to vector<8x128xf32>
    %142 = arith.divf %138, %141 : vector<8x128xf32>
    %143 = arith.addf %129, %142 : vector<8x128xf32>
    %cst_44 = arith.constant 1.000000e-01 : f32
    %144 = vector.broadcast %cst_44 : f32 to vector<8x128xf32>
    %145 = arith.mulf %143, %144 : vector<8x128xf32>
    %c0_45 = arith.constant 0 : index
    %c0_46 = arith.constant 0 : index
    %146 = vector.load %arg4[%c0_45, %c0_46] : memref<8x128xf32, #tpu.memory_space<vmem>>, vector<8x128xf32>
    tpu.vector_store %arg4[%c0_45, %c0_46], %145 {strides = array<i32>} : memref<8x128xf32, #tpu.memory_space<vmem>>, vector<8x128xf32>,
    return
  }
  func.func @transform_0(%arg0: i32) -> (i32, i32) {
    %c0_i32 = arith.constant 0 : i32
    %c0_i32_0 = arith.constant 0 : i32
    return %c0_i32, %arg0 : i32, i32
  }
  func.func @transform_1(%arg0: i32) -> (i32, i32) {
    %c0_i32 = arith.constant 0 : i32
    %c0_i32_0 = arith.constant 0 : i32
    return %c0_i32, %arg0 : i32, i32
  }
  func.func @transform_2(%arg0: i32) -> (i32, i32, i32) {
    %c0_i32 = arith.constant 0 : i32
    %c0_i32_0 = arith.constant 0 : i32
    %c0_i32_1 = arith.constant 0 : i32
    return %c0_i32, %c0_i32_0, %arg0 : i32, i32, i32
  }
  func.func @transform_3(%arg0: i32) -> (i32, i32) {
    %c0_i32 = arith.constant 0 : i32
    %c0_i32_0 = arith.constant 0 : i32
    return %c0_i32, %arg0 : i32, i32
  }
}

</mosaic_0001>

<bundles_post_ra>
// kernel: tpu_custom_call.1
= control target key start
LH: loop header
LB: loop body
LE: loop exit
PB: predicated region body
PF: predicated region fallthrough
CT: control target
= control target key end

     0   :  { %s1295_s0 = inlined_call_operand.hbm [shape: f32[8,256], index: 0, kind: input, shape index: {}]   ;;  %s1296_s1 = inlined_call_operand.hbm [shape: f32[8,256], index: 1, kind: input, shape index: {}]   ;;  %s1297_s2 = inlined_call_operand.hbm [shape: f32[10,8,256], index: 2, kind: input, shape index: {}]   ;;  %s1298_s3 = inlined_call_operand.hbm [shape: f32[8,256], index: 3, kind: output, shape index: {}]  }
   0x1   :  { %1303 = sst [smem:[#allocation12_spill]] %s1296_s1 }
   0x2   :  { %8 = vsyncpa [#allocation3], 0 }
   0x3   :  { %10 = vsyncpa [#allocation3 + $0x1], 0 }
   0x4   :  { %11 = vsyncpa [#allocation6], 0 }
   0x5   :  { %13 = vsyncpa [#allocation6 + $0x1], 0 }
   0x6   :  { %14 = vsyncpa [#allocation4], 0 }
   0x7   :  { %16 = vsyncpa [#allocation4 + $0x1], 0  ;;  %s928_s12 = smov 0   ;;  %s930_s13 = smov 0  }
   0x8   :  { %s932_s14 = smov 0   ;;  %s934_s15 = smov 0  }
   0x9 LB: > { %s949_s16 = sadd.s32 4294967295, %s899_s15   ;;  %s611_s17 = sadd.s32 4294967294, %s899_s15   ;;  %s899_s15 = sphi %s934_s15, %s1320_s15   ;;  %s895_s14 = sphi %s932_s14, %s1319_s14   ;;  %s891_s13 = sphi %s930_s13, %s1318_s13   ;;  %s887_s12 = sphi %s928_s12, %s1317_s12  }
   0xa   : > { %s953_s18 = sadd.s32 1, %s899_s15   ;;  %s29_s19 = sadd.s32 1, %s895_s14 }
   0xb   : > { %s26_s20 = ssub.s32 %s899_s15, %s953_s18  ;;  %p36_p0 = scmp.ne.s32.totalorder %s895_s14, %s891_s13 }
   0xc   : > { %p27_p1 = scmp.eq.s32.totalorder %s26_s20, 0  ;;  %p37_p2 = scmp.eq.s32.totalorder %s899_s15, 0 }
   0xd   : > { %p42_p3 = scmp.ne.s32.totalorder %s891_s13, %s887_s12  ;;  %p43_p4 = scmp.eq.s32.totalorder %s949_s16, 0 }
   0xe   : > { %s965_s21 = scalar_select %p27_p1, %s895_s14, %s29_s19  }
   0xf   : > { %p38_p5 = por %p37_p2, %p36_p0  ;;  %p967_p6 = por %p43_p4, %p42_p3 }
  0x10   : > { %p118_p7 = scmp.eq.s32.totalorder %s949_s16, 1  ;;  %p124_p8 = scmp.eq.s32.totalorder %s611_s17, 1 }
  0x11   : > { %s1304_s22 = scalar_select %p967_p6, 1, 0 }
  0x12   : > { %p660_p10 = scmp.lt.s32.totalorder %s899_s15, 2  ;;  %p974_p11 = por %p118_p7, %p36_p0 }
  0x13   : > { %p978_p12 = por %p124_p8, %p42_p3  ;;  %s983_s25 = sand.u32 1, %s895_s14  }
  0x14   : > { %s1305_s23 = scalar_select %p974_p11, 1, 0 }
  0x15   : > { %s1306_s24 = scalar_select %p978_p12, 1, 0 }
  0x16   : > { %s986_s26 = sshll.u32 %s899_s15, 7  ;;  %s614_s27 = sshll.u32 %s983_s25, 3 }
  0x17   : > { %p989_p13 = pnand %p660_p10, %p38_p5  ;;  %s162_s29 = sand.u32 1, %s899_s15  }
  0x18   : > { %s1308_s1 = sld [smem:[#allocation12_spill]]  ;;  %s166_s6 = scalar_lea.vmem [#allocation5], %s614_s27 }
  0x19   : > { %s1307_s28 = scalar_select %p989_p13, 1, 0 }
  0x1a   : > { %s173_s7 = sshll.u32 %s166_s6, 4  ;;  %s636_s8 = smul.u32 80, %s983_s25  ;;  %s1002_s7 = int_to_ptr.vmem [resolvable:$true] %s173_s7 }
  0x1b   : > { %s1005_s9 = scalar_lea.sflag [#allocation6], %s162_s29  ;;  %p1011_p1 = pneg %p989_p13 }
  0x1e   : > { %s998_s5 = scalar_lea.hbm %s1308_s1, %s986_s26  ;;  %s744_s20 = scalar_lea.hbm %s1308_s1, 256 }
  0x1f   : > { %s739_s10 = scalar_lea.hbm %s998_s5, 128  ;;  %p745_p4 = scmp.lt.u32.totalorder %s998_s5, %s1308_s1 }
  0x20   : > { %p740_p0 = scmp.ne.s32.totalorder %s998_s5, %s739_s10  ;;  %p746_p5 = scmp.lt.u32.totalorder %s744_s20, %s739_s10 }
  0x21   : > { %p748_p8 = scmp.lt.u32.totalorder %s739_s10, %s998_s5 }
  0x22   : > { %p742_p2 = pnand %p1011_p1, %p740_p0  ;;  %p747_p7 = por %p746_p5, %p745_p4 }
  0x24   : > { %p743_p3 = pneg %p742_p2  ;;  %p749_p10 = por %p748_p8, %p747_p7 }
  0x26   : > { %p750_p9 = pnand %p749_p10, %p743_p3 }
  0x28   : > { %753 = shalt.err (!%p750_p9)
}
  0x29   : > { %s754_s29 = scalar_lea.vmem %s1002_s7, 128  ;;  %s901_s6 = smov [#allocation5]  }
  0x2a   : > { %p755_p0 = scmp.ne.s32.totalorder %s1002_s7, %s754_s29  ;;  %s759_s17 = sshll.u32 %s901_s6, 4  ;;  %s760_s17 = int_to_ptr.vmem [resolvable:$false] %s759_s17 }
  0x2b   : > { %s761_s19 = scalar_lea.vmem %s760_s17, 256  ;;  %p762_p11 = scmp.lt.s32.totalorder %s1002_s7, %s760_s17 }
  0x2c   : > { %p757_p2 = pnand %p755_p0, %p1011_p1  ;;  %p763_p6 = scmp.lt.s32.totalorder %s761_s19, %s754_s29 }
  0x2e   : > { %p758_p12 = pneg %p757_p2  ;;  %p764_p4 = por %p763_p6, %p762_p11 }
  0x30   : > { %p765_p5 = pnand %p764_p4, %p758_p12 }
  0x32   : > { %768 = shalt.err (!%p765_p5)
}
  0x33   : > { %652 = dma.hbm_to_vmem [thread:$0]  (!%p989_p13), %s998_s5, 128, %s1002_s7, %s1005_s9  }
  0x34   : > { %s1039_s30 = scalar_lea.hbm %s1297_s2, %s986_s26  ;;  %s184_s4 = scalar_lea.vmem [#allocation7], %s636_s8 }
  0x35   : > { %s190_s29 = sshll.u32 %s184_s4, 4  ;;  %p619_p6 = scmp.ge.s32.totalorder %s899_s15, 1  ;;  %s1044_s29 = int_to_ptr.vmem [resolvable:$true] %s190_s29 }
  0x36   : > { %p198_p9 = scmp.lt.s32.totalorder %s899_s15, 3  ;;  %s1055_s5 = scalar_lea.hbm %s1295_s0, %s986_s26 }
  0x37   : > { %s148_s7 = scalar_lea.vmem [#allocation2], %s614_s27  ;;  %s145_s10 = scalar_lea.sflag [#allocation3], %s983_s25 }
  0x38   : > { %p1047_p11 = pnand %p619_p6, %p198_p9  ;;  %s155_s8 = sshll.u32 %s148_s7, 4  ;;  %s156_s8 = int_to_ptr.vmem [resolvable:$true] %s155_s8 }
  0x39   : > { %s769_s20 = scalar_lea.hbm %s1055_s5, 128  ;;  %s774_s17 = scalar_lea.hbm %s1295_s0, 256 }
  0x3a   : > { %s1310_s6 = scalar_select %p1047_p11, 1, 0 }
  0x3b   : > { %p770_p12 = scmp.ne.s32.totalorder %s1055_s5, %s769_s20  ;;  %p775_p8 = scmp.lt.u32.totalorder %s1055_s5, %s1295_s0 }
  0x3c   : > { %p776_p10 = scmp.lt.u32.totalorder %s774_s17, %s769_s20  ;;  %p778_p2 = scmp.lt.u32.totalorder %s769_s20, %s1055_s5 }
  0x3d   : > { %p772_p3 = pnand %p770_p12, %p1011_p1 }
  0x3e   : > { %p777_p0 = por %p776_p10, %p775_p8 }
  0x3f   : > { %p773_p7 = pneg %p772_p3 }
  0x40   : > { %p779_p4 = por %p778_p2, %p777_p0 }
  0x42   : > { %p780_p5 = pnand %p779_p4, %p773_p7 }
  0x44   : > { %783 = shalt.err (!%p780_p5)
}
  0x45   : > { %s784_s25 = scalar_lea.vmem %s156_s8, 128  ;;  %s902_s27 = smov [#allocation2]  }
  0x46   : > { %p785_p6 = scmp.ne.s32.totalorder %s156_s8, %s784_s25  ;;  %s789_s7 = sshll.u32 %s902_s27, 4  ;;  %s790_s7 = int_to_ptr.vmem [resolvable:$false] %s789_s7 }
  0x47   : > { %s791_s1 = scalar_lea.vmem %s790_s7, 256  ;;  %p792_p3 = scmp.lt.s32.totalorder %s156_s8, %s790_s7 }
  0x48   : > { %p787_p9 = pnand %p785_p6, %p1011_p1  ;;  %p793_p11 = scmp.lt.s32.totalorder %s791_s1, %s784_s25 }
  0x4a   : > { %p788_p12 = pneg %p787_p9  ;;  %p794_p13 = por %p793_p11, %p792_p3 }
  0x4c   : > { %p795_p8 = pnand %p794_p13, %p788_p12 }
  0x4e   : > { %798 = shalt.err (!%p795_p8)
}
  0x4f   : > { %p1311_p10 = scmp.ne.s32.totalorder %s1307_s28, 0  ;;  %s799_s20 = scalar_lea.hbm %s1039_s30, 1280 }
  0x50   : > { %p800_p7 = scmp.ne.s32.totalorder %s1039_s30, %s799_s20  ;;  %s804_s26 = scalar_lea.hbm %s1297_s2, 2560 }
  0x51   : > { %649 = dma.hbm_to_vmem [thread:$0]  (!%p1311_p10), %s1055_s5, 128, %s156_s8, %s145_s10  }
  0x52   : > { %p802_p0 = pnand %p800_p7, %p1011_p1  ;;  %p805_p13 = scmp.lt.u32.totalorder %s1039_s30, %s1297_s2 }
  0x53   : > { %p806_p11 = scmp.lt.u32.totalorder %s804_s26, %s799_s20  ;;  %p808_p5 = scmp.lt.u32.totalorder %s799_s20, %s1039_s30 }
  0x54   : > { %p803_p2 = pneg %p802_p0 }
  0x55   : > { %p807_p4 = por %p806_p11, %p805_p13 }
  0x57   : > { %p809_p6 = por %p808_p5, %p807_p4 }
  0x59   : > { %p810_p9 = pnand %p809_p6, %p803_p2 }
  0x5b   : > { %813 = shalt.err (!%p810_p9)
}
  0x5c   : > { %s814_s5 = scalar_lea.vmem %s1044_s29, 1280  ;;  %s903_s8 = smov [#allocation7]  }
  0x5d   : > { %p815_p12 = scmp.ne.s32.totalorder %s1044_s29, %s814_s5  ;;  %s819_s10 = sshll.u32 %s903_s8, 4  ;;  %s820_s10 = int_to_ptr.vmem [resolvable:$false] %s819_s10 }
  0x5e   : > { %s821_s27 = scalar_lea.vmem %s820_s10, 2560  ;;  %p822_p7 = scmp.lt.s32.totalorder %s1044_s29, %s820_s10 }
  0x5f   : > { %p817_p3 = pnand %p815_p12, %p1011_p1  ;;  %p823_p0 = scmp.lt.s32.totalorder %s821_s27, %s814_s5 }
  0x61   : > { %p818_p8 = pneg %p817_p3  ;;  %p824_p13 = por %p823_p0, %p822_p7 }
  0x63   : > { %p825_p11 = pnand %p824_p13, %p818_p8 }
  0x65   : > { %828 = shalt.err (!%p825_p11)
}
  0x66   : > { %s904_s7 = smov 256   ;;  %s905_s1 = smov 128  }
  0x67   : > { %s906_s20 = smov 8   ;;  %p1312_p1 = scmp.ne.s32.totalorder %s1310_s6, 0 }
  0x68   : > { %655 = dma.hbm_to_vmem [thread:$0]  (!%p1311_p10), %s1039_s30, 1280, %s1044_s29, %s1005_s9, %s904_s7, %s905_s1, %s906_s20  }
  0x69   : > { %202 = sbr.rel (%p1312_p1) target bundleno = 233 (0xe9), region = 32  ;;  %s1102_s11 = sand.u32 (!%p1312_p1), 1, %s891_s13  }
  0x6a   : > { %s1105_s4 = sshll.u32 (!%p1312_p1), %s1102_s11, 3  ;;  %s205_s17 = scalar_lea.sflag (!%p1312_p1), [#allocation3], %s1102_s11 }
  0x6b   : > { %s208_s26 = scalar_lea.vmem (!%p1312_p1), [#allocation2], %s1105_s4  ;;  %p1313_p2 = scmp.ne.s32.totalorder (!%p1312_p1), %s1304_s22, 0 }
  0x70   : > { %874 = dma.done.wait (%p1313_p2), %s205_s17, 128  }
  0x71   : > { %876 = vsyncadd (%p1313_p2), %s205_s17, 4294967168  ;;  %s213_s28 = sand.u32 1, %s949_s16   ;;  %s217_s30 = scalar_lea.vmem [#allocation5], %s1105_s4 }
  0x72   : > { %s214_s9 = scalar_lea.sflag [#allocation6], %s213_s28 }
  0x73   : > { %878 = dma.done.wait (%p1313_p2), %s214_s9, 1408  }
  0x74   : > { %880 = vsyncadd (%p1313_p2), %s214_s9, 4294965888  ;;  %v260_v0 = vld [vmem:[%s217_s30] sm:$0xff]  ;;  %s637_s29 = smul.u32 80, %s1102_s11  ;;  %v1132_v11 = vld [vmem:[%s208_s26] sm:$0xff]  ;;  %s633_s22 = sshll.u32 %s949_s16, 7 }
  0x75   : > { %v261_v1 = vmul.f32 1.442695, %v260_v0  ;;  %s258_s19 = scalar_lea.vmem [#allocation8], %s1105_s4  ;;  %s1251_s10 = scalar_lea.hbm %s1298_s3, %s633_s22 }
  0x76   : > { %s1120_s6 = scalar_lea.vmem [#allocation7], %s637_s29  ;;  %s498_s25 = sshll.u32 %s258_s19, 4  ;;  %s1253_s25 = int_to_ptr.vmem [resolvable:$true] %s498_s25 }
  0x77   : > { %697 = vpow2.f32 %v261_v1  ;;  %v263_v2 = vld [vmem:[%s1120_s6] sm:$0xff]  ;;  %v623_v3 = vld [vmem:[%s1120_s6 + $0x8] sm:$0xff]  ;;  %v624_v4 = vld [vmem:[%s1120_s6 + $0x10] sm:$0xff]  ;;  %s485_s27 = scalar_lea.sflag [#allocation4], %s1102_s11  ;;  %s829_s7 = scalar_lea.vmem %s1253_s25, 128 }
  0x78   : > { %v625_v5 = vld [vmem:[%s1120_s6 + $0x18] sm:$0xff]  ;;  %v626_v6 = vld [vmem:[%s1120_s6 + $0x20] sm:$0xff]  ;;  %v627_v7 = vld [vmem:[%s1120_s6 + $0x28] sm:$0xff]  ;;  %p830_p10 = scmp.ne.s32.totalorder %s1253_s25, %s829_s7  ;;  %p1314_p4 = scmp.ne.s32.totalorder %s1305_s23, 0 }
  0x79   : > { %v628_v8 = vld [vmem:[%s1120_s6 + $0x30] sm:$0xff]  ;;  %v629_v9 = vld [vmem:[%s1120_s6 + $0x38] sm:$0xff]  ;;  %s907_s16 = smov [#allocation8]  }
  0x7a   : > { %p831_p5 = pnand %p830_p10, %p1314_p4  ;;  %s833_s1 = sshll.u32 %s907_s16, 4  ;;  %s834_s1 = int_to_ptr.vmem [resolvable:$false] %s833_s1 }
  0x7b   : > { %s835_s20 = scalar_lea.vmem %s834_s1, 256  ;;  %p836_p9 = scmp.lt.s32.totalorder %s1253_s25, %s834_s1 }
  0x7c   : > { %p832_p6 = pneg %p831_p5  ;;  %p837_p12 = scmp.lt.s32.totalorder %s835_s20, %s829_s7 }
  0x7e   : > { %p838_p3 = por %p837_p12, %p836_p9 }
  0x80   : > { %p839_p8 = pnand %p838_p3, %p832_p6 }
  0x81   : > { %v1130_v10 = vpop.eup %697 }
  0x82   : > { %v264_v12 = vmul.f32 %v1130_v10, %v263_v2  ;;  %v286_v13 = vmul.f32 %v1130_v10, %v623_v3  ;;  %v308_v14 = vmul.f32 %v1130_v10, %v624_v4  ;;  %v330_v15 = vmul.f32 %v1130_v10, %v625_v5 }
  0x83   : > { %v352_v16 = vmul.f32 %v1130_v10, %v626_v6  ;;  %v374_v17 = vmul.f32 %v1130_v10, %v627_v7  ;;  %v396_v18 = vmul.f32 %v1130_v10, %v628_v8  ;;  %v418_v19 = vmul.f32 %v1130_v10, %v629_v9 }
  0x84   : > { %v1143_v20 = vadd.f32 %v264_v12, %v1132_v11  ;;  %v1146_v21 = vadd.f32 %v286_v13, %v1132_v11  ;;  %v1149_v22 = vadd.f32 %v308_v14, %v1132_v11  ;;  %v1152_v23 = vadd.f32 %v330_v15, %v1132_v11  ;;  %v630_v14 = vld [vmem:[%s1120_s6 + $0x40] sm:$0xff] }
  0x85   : > { %v1155_v24 = vadd.f32 %v352_v16, %v1132_v11  ;;  %v1158_v25 = vadd.f32 %v374_v17, %v1132_v11  ;;  %v1161_v26 = vadd.f32 %v396_v18, %v1132_v11  ;;  %v1164_v27 = vadd.f32 %v418_v19, %v1132_v11  ;;  %v631_v19 = vld [vmem:[%s1120_s6 + $0x48] sm:$0xff] }
  0x86   : > { %v266_v28 = vrot.slane %v1143_v20, 4  ;;  %v288_v29 = vrot.slane %v1146_v21, 4  ;;  %v310_v30 = vrot.slane %v1149_v22, 4  ;;  %v332_v31 = vrot.slane %v1152_v23, 4 }
  0x87   : > { %v354_v32 = vrot.slane %v1155_v24, 4  ;;  %v376_v33 = vrot.slane %v1158_v25, 4  ;;  %v398_v34 = vrot.slane %v1161_v26, 4  ;;  %v420_v35 = vrot.slane %v1164_v27, 4 }
  0x88   : > { %v267_v36 = vmax.f32 %v1143_v20, %v266_v28  ;;  %v289_v37 = vmax.f32 %v1146_v21, %v288_v29  ;;  %v311_v38 = vmax.f32 %v1149_v22, %v310_v30  ;;  %v333_v39 = vmax.f32 %v1152_v23, %v332_v31 }
  0x89   : > { %v355_v40 = vmax.f32 %v1155_v24, %v354_v32  ;;  %v377_v41 = vmax.f32 %v1158_v25, %v376_v33  ;;  %v399_v42 = vmax.f32 %v1161_v26, %v398_v34  ;;  %v421_v43 = vmax.f32 %v1164_v27, %v420_v35 }
  0x8a   : > { %v268_v44 = vrot.slane %v267_v36, 2  ;;  %v290_v45 = vrot.slane %v289_v37, 2  ;;  %v312_v46 = vrot.slane %v311_v38, 2  ;;  %v334_v47 = vrot.slane %v333_v39, 2 }
  0x8b   : > { %v356_v48 = vrot.slane %v355_v40, 2  ;;  %v378_v49 = vrot.slane %v377_v41, 2  ;;  %v400_v50 = vrot.slane %v399_v42, 2  ;;  %v422_v51 = vrot.slane %v421_v43, 2 }
  0x8c   : > { %v269_v52 = vmax.f32 %v267_v36, %v268_v44  ;;  %v291_v53 = vmax.f32 %v289_v37, %v290_v45  ;;  %v313_v54 = vmax.f32 %v311_v38, %v312_v46  ;;  %v335_v55 = vmax.f32 %v333_v39, %v334_v47 }
  0x8d   : > { %v357_v56 = vmax.f32 %v355_v40, %v356_v48  ;;  %v379_v57 = vmax.f32 %v377_v41, %v378_v49  ;;  %v401_v58 = vmax.f32 %v399_v42, %v400_v50  ;;  %v423_v59 = vmax.f32 %v421_v43, %v422_v51 }
  0x8e   : > { %v270_v60 = vrot.slane %v269_v52, 1  ;;  %v292_v61 = vrot.slane %v291_v53, 1  ;;  %v314_v62 = vrot.slane %v313_v54, 1  ;;  %v336_v63 = vrot.slane %v335_v55, 1 }
  0x8f   : > { %v358_v0 = vrot.slane %v357_v56, 1  ;;  %v380_v1 = vrot.slane %v379_v57, 1  ;;  %v402_v2 = vrot.slane %v401_v58, 1  ;;  %v424_v3 = vrot.slane %v423_v59, 1 }
  0x90   : > { %v271_v4 = vmax.f32 %v269_v52, %v270_v60  ;;  %v293_v5 = vmax.f32 %v291_v53, %v292_v61  ;;  %v315_v6 = vmax.f32 %v313_v54, %v314_v62  ;;  %v337_v7 = vmax.f32 %v335_v55, %v336_v63 }
  0x91   : > { %v359_v8 = vmax.f32 %v357_v56, %v358_v0  ;;  %v381_v9 = vmax.f32 %v379_v57, %v380_v1  ;;  %v403_v12 = vmax.f32 %v401_v58, %v402_v2  ;;  %v425_v13 = vmax.f32 %v423_v59, %v424_v3 }
  0x92   : > { %v272_v15 = vsub.f32 %v1143_v20, %v271_v4  ;;  %v294_v16 = vsub.f32 %v1146_v21, %v293_v5  ;;  %v316_v17 = vsub.f32 %v1149_v22, %v315_v6  ;;  %v338_v18 = vsub.f32 %v1152_v23, %v337_v7 }
  0x93   : > { %v360_v28 = vsub.f32 %v1155_v24, %v359_v8  ;;  %v382_v29 = vsub.f32 %v1158_v25, %v381_v9  ;;  %v404_v30 = vsub.f32 %v1161_v26, %v403_v12  ;;  %v440_v34 = vmul.f32 %v1130_v10, %v630_v14 }
  0x94   : > { %v273_v31 = vmul.f32 1.442695, %v272_v15  ;;  %v295_v32 = vmul.f32 1.442695, %v294_v16  ;;  %v317_v33 = vmul.f32 1.442695, %v316_v17  ;;  %v462_v20 = vmul.f32 %v1130_v10, %v631_v19 }
  0x95   : > { %v339_v35 = vmul.f32 1.442695, %v338_v18  ;;  %v361_v21 = vmul.f32 1.442695, %v360_v28  ;;  %v426_v22 = vsub.f32 %v1164_v27, %v425_v13  ;;  %v1195_v23 = vadd.f32 %v440_v34, %v1132_v11 }
  0x96   : > { %699 = vpow2.f32 %v273_v31  ;;  %v383_v24 = vmul.f32 1.442695, %v382_v29  ;;  %v1198_v25 = vadd.f32 %v462_v20, %v1132_v11  ;;  %v405_v26 = vmul.f32 1.442695, %v404_v30 }
  0x97   : > { %701 = vpow2.f32 %v295_v32  ;;  %v442_v36 = vrot.slane %v1195_v23, 4  ;;  %v427_v10 = vmul.f32 1.442695, %v426_v22 }
  0x98   : > { %703 = vpow2.f32 %v317_v33  ;;  %v464_v37 = vrot.slane %v1198_v25, 4 }
  0x99   : > { %705 = vpow2.f32 %v339_v35  ;;  %v443_v38 = vmax.f32 %v1195_v23, %v442_v36 }
  0x9a   : > { %707 = vpow2.f32 %v361_v21  ;;  %v465_v27 = vmax.f32 %v1198_v25, %v464_v37 }
  0x9b   : > { %709 = vpow2.f32 %v383_v24  ;;  %v444_v39 = vrot.slane %v443_v38, 2 }
  0x9c   : > { %711 = vpow2.f32 %v405_v26  ;;  %v466_v40 = vrot.slane %v465_v27, 2 }
  0x9d   : > { %713 = vpow2.f32 %v427_v10  ;;  %v445_v43 = vmax.f32 %v443_v38, %v444_v39 }
  0x9e   : > { %v467_v46 = vmax.f32 %v465_v27, %v466_v40 }
  0x9f   : > { %v446_v57 = vrot.slane %v445_v43, 1 }
  0xa0   : > { %v1204_v11 = vpop.eup %699  ;;  %v468_v62 = vrot.slane %v467_v46, 1 }
  0xa1   : > { %v1206_v41 = vpop.eup %701  ;;  %v275_v42 = vrot.slane %v1204_v11, 4  ;;  %v447_v12 = vmax.f32 %v445_v43, %v446_v57 }
  0xa2   : > { %v1209_v44 = vpop.eup %703  ;;  %v297_v45 = vrot.slane %v1206_v41, 4  ;;  %v469_v15 = vmax.f32 %v467_v46, %v468_v62 }
  0xa3   : > { %v1212_v47 = vpop.eup %705  ;;  %v276_v48 = vadd.f32 %v1204_v11, %v275_v42  ;;  %v319_v49 = vrot.slane %v1209_v44, 4  ;;  %v448_v33 = vsub.f32 %v1195_v23, %v447_v12 }
  0xa4   : > { %v1216_v50 = vpop.eup %707  ;;  %v298_v51 = vadd.f32 %v1206_v41, %v297_v45  ;;  %v341_v52 = vrot.slane %v1212_v47, 4  ;;  %v470_v34 = vsub.f32 %v1198_v25, %v469_v15 }
  0xa5   : > { %v1220_v53 = vpop.eup %709  ;;  %v277_v54 = vrot.slane %v276_v48, 2  ;;  %v320_v55 = vadd.f32 %v1209_v44, %v319_v49  ;;  %v363_v56 = vrot.slane %v1216_v50, 4  ;;  %v449_v26 = vmul.f32 1.442695, %v448_v33 }
  0xa6   : > { %v1224_v58 = vpop.eup %711  ;;  %v299_v59 = vrot.slane %v298_v51, 2  ;;  %v342_v60 = vadd.f32 %v1212_v47, %v341_v52  ;;  %v385_v61 = vrot.slane %v1220_v53, 4  ;;  %v471_v36 = vmul.f32 1.442695, %v470_v34 }
  0xa7   : > { %v278_v63 = vadd.f32 %v277_v54, %v276_v48  ;;  %v321_v0 = vrot.slane %v320_v55, 2  ;;  %v364_v1 = vadd.f32 %v1216_v50, %v363_v56  ;;  %v407_v2 = vrot.slane %v1224_v58, 4  ;;  %v1230_v3 = vpop.eup %713 }
  0xa8   : > { %v300_v4 = vadd.f32 %v299_v59, %v298_v51  ;;  %v343_v5 = vrot.slane %v342_v60, 2  ;;  %v386_v6 = vadd.f32 %v1220_v53, %v385_v61  ;;  %v429_v19 = vrot.slane %v1230_v3, 4 }
  0xa9   : > { %v279_v7 = vrot.slane %v278_v63, 1  ;;  %v322_v8 = vadd.f32 %v321_v0, %v320_v55  ;;  %v365_v9 = vrot.slane %v364_v1, 2  ;;  %v408_v18 = vadd.f32 %v1224_v58, %v407_v2 }
  0xaa   : > { %v301_v13 = vrot.slane %v300_v4, 1  ;;  %v344_v14 = vadd.f32 %v343_v5, %v342_v60  ;;  %v387_v31 = vrot.slane %v386_v6, 2  ;;  %v430_v20 = vadd.f32 %v1230_v3, %v429_v19 }
  0xab   : > { %v280_v16 = vadd.f32 %v279_v7, %v278_v63  ;;  %v323_v17 = vrot.slane %v322_v8, 1  ;;  %v366_v30 = vadd.f32 %v365_v9, %v364_v1  ;;  %v409_v35 = vrot.slane %v408_v18, 2 }
  0xac   : > { %v302_v28 = vadd.f32 %v301_v13, %v300_v4  ;;  %v345_v29 = vrot.slane %v344_v14, 1  ;;  %v388_v24 = vadd.f32 %v387_v31, %v386_v6  ;;  %v431_v37 = vrot.slane %v430_v20, 2 }
  0xad   : > { %715 = vrcp.f32 %v280_v16  ;;  %v324_v32 = vadd.f32 %v323_v17, %v322_v8  ;;  %v367_v22 = vrot.slane %v366_v30, 1  ;;  %v410_v27 = vadd.f32 %v409_v35, %v408_v18 }
  0xae   : > { %717 = vrcp.f32 %v302_v28  ;;  %v346_v21 = vadd.f32 %v345_v29, %v344_v14  ;;  %v389_v38 = vrot.slane %v388_v24, 1  ;;  %v432_v42 = vadd.f32 %v431_v37, %v430_v20 }
  0xaf   : > { %719 = vrcp.f32 %v324_v32  ;;  %v368_v10 = vadd.f32 %v367_v22, %v366_v30  ;;  %v411_v40 = vrot.slane %v410_v27, 1 }
  0xb0   : > { %721 = vrcp.f32 %v346_v21  ;;  %v390_v25 = vadd.f32 %v389_v38, %v388_v24  ;;  %v433_v49 = vrot.slane %v432_v42, 1 }
  0xb1   : > { %723 = vpow2.f32 %v449_v26  ;;  %v412_v48 = vadd.f32 %v411_v40, %v410_v27 }
  0xb2   : > { %725 = vpow2.f32 %v471_v36  ;;  %v434_v57 = vadd.f32 %v433_v49, %v432_v42 }
  0xb3   : > { %727 = vrcp.f32 %v368_v10 }
  0xb4   : > { %729 = vrcp.f32 %v390_v25 }
  0xb5   : > { %731 = vrcp.f32 %v412_v48 }
  0xb6   : > { %733 = vrcp.f32 %v434_v57 }
  0xb7   : > { %v716_v23 = vpop.eup %715 }
  0xb8   : > { %v718_v39 = vpop.eup %717  ;;  %v282_v43 = vmul.f32 %v716_v23, %v1204_v11 }
  0xb9   : > { %v304_v45 = vmul.f32 %v718_v39, %v1206_v41  ;;  %v720_v46 = vpop.eup %719 }
  0xba   : > { %v326_v52 = vmul.f32 %v720_v46, %v1209_v44  ;;  %v722_v54 = vpop.eup %721 }
  0xbb   : > { %v305_v51 = vadd.f32 %v304_v45, %v282_v43  ;;  %v724_v55 = vpop.eup %723  ;;  %v348_v61 = vmul.f32 %v722_v54, %v1212_v47 }
  0xbc   : > { %v726_v56 = vpop.eup %725  ;;  %v451_v59 = vrot.slane %v724_v55, 4 }
  0xbd   : > { %v327_v60 = vadd.f32 %v326_v52, %v305_v51  ;;  %v473_v62 = vrot.slane %v726_v56, 4  ;;  %v728_v11 = vpop.eup %727 }
  0xbe   : > { %v452_v63 = vadd.f32 %v724_v55, %v451_v59  ;;  %v370_v2 = vmul.f32 %v728_v11, %v1216_v50  ;;  %v730_v44 = vpop.eup %729 }
  0xbf   : > { %v474_v41 = vadd.f32 %v726_v56, %v473_v62  ;;  %v349_v1 = vadd.f32 %v348_v61, %v327_v60  ;;  %v392_v9 = vmul.f32 %v730_v44, %v1220_v53  ;;  %v732_v13 = vpop.eup %731 }
  0xc0   : > { %v453_v0 = vrot.slane %v452_v63, 2  ;;  %v414_v16 = vmul.f32 %v732_v13, %v1224_v58  ;;  %v734_v50 = vpop.eup %733 }
  0xc1   : > { %v475_v4 = vrot.slane %v474_v41, 2  ;;  %v371_v8 = vadd.f32 %v370_v2, %v349_v1  ;;  %v436_v18 = vmul.f32 %v734_v50, %v1230_v3 }
  0xc2   : > { %v454_v5 = vadd.f32 %v453_v0, %v452_v63 }
  0xc3   : > { %v476_v6 = vadd.f32 %v475_v4, %v474_v41  ;;  %v393_v15 = vadd.f32 %v392_v9, %v371_v8 }
  0xc4   : > { %v455_v7 = vrot.slane %v454_v5, 1 }
  0xc5   : > { %v477_v12 = vrot.slane %v476_v6, 1  ;;  %v415_v17 = vadd.f32 %v414_v16, %v393_v15 }
  0xc6   : > { %v456_v47 = vadd.f32 %v455_v7, %v454_v5 }
  0xc7   : > { %v478_v14 = vadd.f32 %v477_v12, %v476_v6  ;;  %v437_v19 = vadd.f32 %v436_v18, %v415_v17 }
  0xc8   : > { %735 = vrcp.f32 %v456_v47 }
  0xc9   : > { %737 = vrcp.f32 %v478_v14 }
  0xd2   : > { %v736_v28 = vpop.eup %735 }
  0xd3   : > { %v738_v53 = vpop.eup %737  ;;  %v458_v29 = vmul.f32 %v736_v28, %v724_v55 }
  0xd4   : > { %v480_v30 = vmul.f32 %v738_v53, %v726_v56 }
  0xd5   : > { %v459_v31 = vadd.f32 %v458_v29, %v437_v19 }
  0xd7   : > { %v481_v32 = vadd.f32 %v480_v30, %v459_v31 }
  0xd9   : > { %v482_v33 = vmul.f32 0.1, %v481_v32 }
  0xdb   : > { %483 = vst [vmem:[%s258_s19] sm:$0xff] %v482_v33 }
  0xdc   : > { %842 = shalt.err (!%p839_p8)
}
  0xdd   : > { %s843_s11 = scalar_lea.hbm %s1251_s10, 128  ;;  %s847_s26 = scalar_lea.hbm %s1298_s3, 256 }
  0xde   : > { %p844_p7 = scmp.ne.s32.totalorder %s1251_s10, %s843_s11  ;;  %p848_p11 = scmp.lt.u32.totalorder %s1251_s10, %s1298_s3 }
  0xdf   : > { %p849_p1 = scmp.lt.u32.totalorder %s847_s26, %s843_s11  ;;  %p851_p10 = scmp.lt.u32.totalorder %s843_s11, %s1251_s10 }
  0xe0   : > { %p845_p0 = pnand %p844_p7, %p1314_p4 }
  0xe1   : > { %p850_p2 = por %p849_p1, %p848_p11 }
  0xe2   : > { %p846_p13 = pneg %p845_p0 }
  0xe3   : > { %p852_p5 = por %p851_p10, %p850_p2 }
  0xe5   : > { %p853_p6 = pnand %p852_p5, %p846_p13 }
  0xe7   : > { %856 = shalt.err (!%p853_p6)
}
  0xe8   : > { %644 = dma.vmem_to_hbm [thread:$0]  (%p1314_p4), %s1253_s25, 128, %s1251_s10, %s485_s27  }
  0xe9 PF: > { %s510_s30 = sand.u32 1, %s887_s12   ;;  %p1315_p9 = scmp.ne.s32.totalorder %s1306_s24, 0 }
  0xea   : > { %p1316_p12 = scmp.ge.s32.totalorder %s899_s15, 2  ;;  %s511_s29 = scalar_lea.sflag [#allocation4], %s510_s30 }
  0xec   : > { %p657_p3 = pnand %p1316_p12, %p1315_p9 }
  0xee   : > { %882 = dma.done.wait (!%p657_p3), %s511_s29, 128  }
  0xef   : > { %884 = vsyncadd (!%p657_p3), %s511_s29, 4294967168  ;;  %p19_p8 = scmp.ge.s32.totalorder %s953_s18, 4   ;;  %s1317_s12 = smov %s891_s13 }
  0xf0   : > { %s1318_s13 = smov %s895_s14  ;;  %s1319_s14 = smov %s965_s21 }
  0xf1   : > { %s1320_s15 = smov %s953_s18  ;;  %21 = sbr.rel (!%p19_p8) target bundleno = 9 (0x9), region = 110 }
  0xf8   :  { %516 = vsyncpa [#allocation3], 1 }
  0xf9   :  { %518 = vsyncpa [#allocation3 + $0x1], 1 }
  0xfa   :  { %519 = vsyncpa [#allocation6], 1 }
  0xfb   :  { %521 = vsyncpa [#allocation6 + $0x1], 1 }
  0xfc   :  { %522 = vsyncpa [#allocation4], 1 }
  0xfd   :  { %524 = vsyncpa [#allocation4 + $0x1], 1 }

</bundles_post_ra>
